<compile_context>
chip_gen: v7x
topology: tpu7x:2x2x1
jax: 0.10.0
libtpu: 0.0.40
codegen_flags: <defaults>
</compile_context>

<pallas_src>
import functools
import math

import jax
import jax.numpy as jnp
from jax.experimental import pallas as pl
from jax.experimental.pallas import tpu as pltpu


def _round_up(x, m):
    return ((x + m - 1) // m) * m


def _tpu_budget():
    """(vmem_capacity_bytes, tensorcores_per_chip) with conservative fallbacks."""
    vmem = 64 * 1024 * 1024            # conservative: v7x has 64 MiB per TensorCore
    cores = 1
    try:
        vmem = int(pltpu.get_tpu_info().vmem_capacity_bytes)
    except Exception:
        pass
    try:
        cores = int(getattr(jax.devices()[0], "num_cores", 1) or 1)
    except Exception:
        pass
    return vmem, cores


def token_encoder_kernel(x_ref,
                         w1_ref, b1_ref, g1_ref, be1_ref,
                         w2_ref, b2_ref, g2_ref, be2_ref,
                         out_ref,
                         *, true_dim, apply_mask, res_link, eps=1e-5):
    x = x_ref[...]                                        # (TB, Dp) bf16 (or f32 if res_link)

    # Hoist parameter loads once per grid step.
    w1 = w1_ref[...]; b1 = b1_ref[...]; g1 = g1_ref[...]; be1 = be1_ref[...]
    w2 = w2_ref[...]; b2 = b2_ref[...]; g2 = g2_ref[...]; be2 = be2_ref[...]

    dp = x.shape[-1]
    inv_n = 1.0 / float(true_dim)
    if apply_mask:
        lane = jax.lax.broadcasted_iota(jnp.int32, (1, dp), 1)
        mask = (lane < true_dim).astype(jnp.float32)
    else:
        mask = None                                       # D is already a 128 multiple

    def layernorm(h, gamma, beta):
        # Invariant: padded lanes of h are exactly zero (zero-padded W columns + zero bias),
        # so the unmasked sum already equals the masked sum -> no mask needed for the mean.
        mu = jnp.sum(h, axis=-1, keepdims=True) * inv_n
        d = h - mu
        if mask is not None:
            d = d * mask                                  # keep padded lanes out of the variance
        var = jnp.sum(d * d, axis=-1, keepdims=True) * inv_n
        # gamma/beta are zero-padded -> padded output lanes stay exactly zero.
        return d * jax.lax.rsqrt(var + eps) * gamma + beta

    # Layer 1: Linear -> LayerNorm -> ReLU  (bf16 MXU matmul, f32 accumulate + elementwise)
    xm = x if x.dtype == jnp.bfloat16 else x.astype(jnp.bfloat16)
    h = jnp.dot(xm, w1, preferred_element_type=jnp.float32) + b1
    h = jnp.maximum(layernorm(h, g1, be1), 0.0)

    # Layer 2: Linear -> LayerNorm -> ReLU  (activate_last=True)
    h = jnp.dot(h.astype(jnp.bfloat16), w2, preferred_element_type=jnp.float32) + b2
    h = jnp.maximum(layernorm(h, g2, be2), 0.0)

    if res_link:                                          # cfg.res_link (default False)
        h = h + x.astype(jnp.float32)

    out_ref[...] = h.astype(out_ref.dtype)


def prepare_params(params, true_dim):
    """Pad + bf16-cast the MLP_layer parameters ONCE, outside the per-call hot path.

    Zero padding of the extra weight columns / biases / gamma / beta is a correctness
    invariant relied upon by the kernel's LayerNorm (padded lanes stay exactly zero).
    """
    w1, b1, g1, be1, w2, b2, g2, be2 = params
    Dp = max(128, _round_up(true_dim, 128))

    def pad2(a, rows, cols, dtype):
        r, c = a.shape
        return jnp.pad(a, ((0, rows - r), (0, cols - c))).astype(dtype)

    vec = lambda a: pad2(a, 1, Dp, jnp.float32)
    return dict(
        Dp=Dp, true_dim=true_dim,
        w1=pad2(w1, Dp, Dp, jnp.bfloat16), w2=pad2(w2, Dp, Dp, jnp.bfloat16),
        b1=vec(b1), g1=vec(g1), be1=vec(be1),
        b2=vec(b2), g2=vec(g2), be2=vec(be2),
    )


def token_encoder_forward(tokens, prepped, *, res_link=False, max_batch_tile=1024):
    """TokenEncoder 'mlp' / norm='ln' forward. tokens: (B, T, E) f32 -> (B, T, E) f32."""
    B, T, E = tokens.shape
    D = T * E
    assert prepped["true_dim"] == D, "prepared params do not match num_tokens*embed_size"
    Dp = prepped["Dp"]

    # res_link keeps x in f32 so the residual add is not bf16-rounded.
    x_dtype = jnp.float32 if res_link else jnp.bfloat16
    x_bytes = jnp.dtype(x_dtype).itemsize

    vmem, cores = _tpu_budget()

    # ---- per-generation batch-tile sizing against the real VMEM footprint ----
    weight_bytes = 2 * Dp * Dp * 2                      # two bf16 weights, single-buffered
    vec_bytes = 6 * Dp * 4                              # biases / gamma / beta, single-buffered
    per_row = Dp * (2 * x_bytes + 2 * 4 + 3 * 4)        # dbl-buf in + dbl-buf out + f32 scratch
    budget = int(vmem * 0.85) - weight_bytes - vec_bytes
    tb_fit = max(8, budget // per_row)

    Bp = _round_up(B, 8)
    TB = min(Bp, max_batch_tile, tb_fit)
    if cores >= 2:                                      # >=2 grid steps per core (v7x megacore)
        TB = min(TB, max(8, _round_up(pl.cdiv(Bp, 2 * cores), 8)))
    if TB >= 16:
        TB = (TB // 16) * 16                            # bf16 sublane packing
    Bp = _round_up(Bp, TB)
    nb = Bp // TB

    x = tokens.reshape(B, D)
    x_p = jnp.pad(x, ((0, Bp - B), (0, Dp - D))).astype(x_dtype)

    batch_spec = pl.BlockSpec((TB, Dp), lambda i: (i, 0))            # streamed over batch
    # Grid-invariant parameters: single-buffer (constant index_map -> no second DMA to overlap)
    mat_spec = pl.BlockSpec((Dp, Dp), lambda i: (0, 0), pipeline_mode=pl.Buffered(1))
    vec_spec = pl.BlockSpec((1, Dp), lambda i: (0, 0), pipeline_mode=pl.Buffered(1))

    footprint = (weight_bytes + vec_bytes
                 + 2 * TB * Dp * x_bytes                 # double-buffered input tile
                 + 2 * TB * Dp * 4                       # double-buffered output tile
                 + 4 * TB * Dp * 4)                      # live f32 intermediates / scratch
    vmem_limit = int(min(max(footprint * 5 // 4, 32 * 1024 * 1024),
                         min(vmem, 128 * 1024 * 1024)))

    cost = pl.CostEstimate(
        flops=2 * 2 * Bp * Dp * Dp,                      # two Dp x Dp matmuls per row
        transcendentals=2 * Bp,                          # one rsqrt per row per LayerNorm
        bytes_accessed=Bp * Dp * (x_bytes + 4) + weight_bytes + vec_bytes,
    )

    out = pl.pallas_call(
        functools.partial(token_encoder_kernel, true_dim=D,
                          apply_mask=(Dp != D), res_link=res_link),
        out_shape=jax.ShapeDtypeStruct((Bp, Dp), jnp.float32),
        grid=(nb,),
        in_specs=[batch_spec,
                  mat_spec, vec_spec, vec_spec, vec_spec,
                  mat_spec, vec_spec, vec_spec, vec_spec],
        out_specs=batch_spec,
        compiler_params=pltpu.CompilerParams(
            dimension_semantics=("parallel",),           # megacore sharding on v7x
            vmem_limit_bytes=vmem_limit),
        cost_estimate=cost,
    )(x_p, prepped["w1"], prepped["b1"], prepped["g1"], prepped["be1"],
      prepped["w2"], prepped["b2"], prepped["g2"], prepped["be2"])

    return out[:B, :D].reshape(B, T, E)


def init_params(key, dim):
    """Parameter shapes of MLP_layer(dim, dim, norm='ln'): two Linear + two LayerNorm."""
    ks = jax.random.split(key, 2)

    def lin(k, fan_in, fan_out):
        bound = 1.0 / math.sqrt(fan_in)
        kw, kb = jax.random.split(k)
        w = jax.random.uniform(kw, (fan_in, fan_out), jnp.float32, -bound, bound)
        b = jax.random.uniform(kb, (1, fan_out), jnp.float32, -bound, bound)
        return w, b

    w1, b1 = lin(ks[0], dim, dim)
    w2, b2 = lin(ks[1], dim, dim)
    g1 = jnp.ones((1, dim), jnp.float32)
    be1 = jnp.zeros((1, dim), jnp.float32)
    g2 = jnp.ones((1, dim), jnp.float32)
    be2 = jnp.zeros((1, dim), jnp.float32)
    return (w1, b1, g1, be1, w2, b2, g2, be2)


def _ln_ref(h, gamma, beta, eps=1e-5):
    mu = jnp.mean(h, axis=-1, keepdims=True)
    var = jnp.mean(jnp.square(h - mu), axis=-1, keepdims=True)
    return (h - mu) * jax.lax.rsqrt(var + eps) * gamma + beta


def reference_forward(tokens, params):
    """Pure-JAX f32 reference of the TokenEncoder 'mlp' / norm='ln' forward."""
    w1, b1, g1, be1, w2, b2, g2, be2 = params
    B, T, E = tokens.shape
    x = tokens.reshape(B, T * E)
    h = jnp.maximum(_ln_ref(x @ w1 + b1, g1, be1), 0.0)
    h = jnp.maximum(_ln_ref(h @ w2 + b2, g2, be2), 0.0)
    return h.reshape(B, T, E)


if __name__ == "__main__":
    batch = 8
    num_tokens = 4
    embed_size = 8
    dim = num_tokens * embed_size

    key = jax.random.PRNGKey(0)
    kx, kp = jax.random.split(key)
    tokens = jax.random.normal(kx, (batch, num_tokens, embed_size), jnp.float32)
    params = init_params(kp, dim)

    prepped = prepare_params(params, dim)                # pad + bf16-cast ONCE (hot path clean)
    out = token_encoder_forward(tokens, prepped)
    out = jax.block_until_ready(out)

    ref = reference_forward(tokens, params)
    assert out.shape == (batch, num_tokens, embed_size)
    # bf16 MXU matmuls vs pure-f32 reference -> loosened tolerance
    assert jnp.allclose(out, ref, atol=5e-2, rtol=5e-2), float(jnp.max(jnp.abs(out - ref)))
    print("KERNEL_OK")
</pallas_src>

<mosaic_0001>
module attributes {stable_mosaic.version = 11 : i64} {
  func.func @token_encoder_kernel(%arg0: i32, %arg1: memref<8x128xbf16, #tpu.memory_space<vmem>>, %arg2: memref<128x128xbf16, #tpu.memory_space<vmem>>, %arg3: memref<1x128xf32, #tpu.memory_space<vmem>>, %arg4: memref<1x128xf32, #tpu.memory_space<vmem>>, %arg5: memref<1x128xf32, #tpu.memory_space<vmem>>, %arg6: memref<128x128xbf16, #tpu.memory_space<vmem>>, %arg7: memref<1x128xf32, #tpu.memory_space<vmem>>, %arg8: memref<1x128xf32, #tpu.memory_space<vmem>>, %arg9: memref<1x128xf32, #tpu.memory_space<vmem>>, %arg10: memref<8x128xf32, #tpu.memory_space<vmem>>) attributes {dimension_semantics = [#tpu.dimension_semantics<parallel>], iteration_bounds = array<i64: 1>, scalar_prefetch = 0 : i64, scratch_operands = 0 : i64, tpu.core_type = #tpu.core_type<tc>, window_params = [{transform_indices = @transform_0, window_bounds = array<i64: 8, 128>}, {pipeline_mode = #tpu.pipeline_mode<synchronous>, transform_indices = @transform_1, window_bounds = array<i64: 128, 128>}, {pipeline_mode = #tpu.pipeline_mode<synchronous>, transform_indices = @transform_2, window_bounds = array<i64: 1, 128>}, {pipeline_mode = #tpu.pipeline_mode<synchronous>, transform_indices = @transform_3, window_bounds = array<i64: 1, 128>}, {pipeline_mode = #tpu.pipeline_mode<synchronous>, transform_indices = @transform_4, window_bounds = array<i64: 1, 128>}, {pipeline_mode = #tpu.pipeline_mode<synchronous>, transform_indices = @transform_5, window_bounds = array<i64: 128, 128>}, {pipeline_mode = #tpu.pipeline_mode<synchronous>, transform_indices = @transform_6, window_bounds = array<i64: 1, 128>}, {pipeline_mode = #tpu.pipeline_mode<synchronous>, transform_indices = @transform_7, window_bounds = array<i64: 1, 128>}, {pipeline_mode = #tpu.pipeline_mode<synchronous>, transform_indices = @transform_8, window_bounds = array<i64: 1, 128>}, {transform_indices = @transform_9, window_bounds = array<i64: 8, 128>}]} {
    %c0 = arith.constant 0 : index
    %c0_0 = arith.constant 0 : index
    %0 = vector.load %arg1[%c0, %c0_0] : memref<8x128xbf16, #tpu.memory_space<vmem>>, vector<8x128xbf16>
    %c0_1 = arith.constant 0 : index
    %c0_2 = arith.constant 0 : index
    %1 = vector.load %arg2[%c0_1, %c0_2] : memref<128x128xbf16, #tpu.memory_space<vmem>>, vector<128x128xbf16>
    %c0_3 = arith.constant 0 : index
    %c0_4 = arith.constant 0 : index
    %2 = vector.load %arg3[%c0_3, %c0_4] : memref<1x128xf32, #tpu.memory_space<vmem>>, vector<1x128xf32>
    %c0_5 = arith.constant 0 : index
    %c0_6 = arith.constant 0 : index
    %3 = vector.load %arg4[%c0_5, %c0_6] : memref<1x128xf32, #tpu.memory_space<vmem>>, vector<1x128xf32>
    %c0_7 = arith.constant 0 : index
    %c0_8 = arith.constant 0 : index
    %4 = vector.load %arg5[%c0_7, %c0_8] : memref<1x128xf32, #tpu.memory_space<vmem>>, vector<1x128xf32>
    %c0_9 = arith.constant 0 : index
    %c0_10 = arith.constant 0 : index
    %5 = vector.load %arg6[%c0_9, %c0_10] : memref<128x128xbf16, #tpu.memory_space<vmem>>, vector<128x128xbf16>
    %c0_11 = arith.constant 0 : index
    %c0_12 = arith.constant 0 : index
    %6 = vector.load %arg7[%c0_11, %c0_12] : memref<1x128xf32, #tpu.memory_space<vmem>>, vector<1x128xf32>
    %c0_13 = arith.constant 0 : index
    %c0_14 = arith.constant 0 : index
    %7 = vector.load %arg8[%c0_13, %c0_14] : memref<1x128xf32, #tpu.memory_space<vmem>>, vector<1x128xf32>
    %c0_15 = arith.constant 0 : index
    %c0_16 = arith.constant 0 : index
    %8 = vector.load %arg9[%c0_15, %c0_16] : memref<1x128xf32, #tpu.memory_space<vmem>>, vector<1x128xf32>
    %9 = tpu.iota {dimensions = array<i32: 1>} : vector<1x128xi32>
    %c32_i32 = arith.constant 32 : i32
    %10 = vector.broadcast %c32_i32 : i32 to vector<1x128xi32>
    %11 = arith.cmpi slt, %9, %10 : vector<1x128xi32>
    %12 = arith.extui %11 : vector<1x128xi1> to vector<1x128xi32>
    %13 = arith.sitofp %12 : vector<1x128xi32> to vector<1x128xf32>
    %cst = arith.constant dense<0.000000e+00> : vector<8x128xf32>
    %14 = tpu.matmul %0, %1, %cst {dimension_numbers = #tpu.dot_dimension_numbers<[1], [0], [0], [1], [0, 0, 1, 1], [], []>} : vector<8x128xbf16>, vector<128x128xbf16>, vector<8x128xf32> -> vector<8x128xf32>
    %15 = vector.broadcast %2 : vector<1x128xf32> to vector<8x128xf32>
    %16 = arith.addf %14, %15 : vector<8x128xf32>
    %cst_17 = arith.constant dense<0.000000e+00> : vector<8xf32>
    %17 = vector.multi_reduction <add>, %16, %cst_17 [1] : vector<8x128xf32> to vector<8xf32>
    %18 = vector.shape_cast %17 : vector<8xf32> to vector<8x1xf32>
    %cst_18 = arith.constant 3.125000e-02 : f32
    %19 = vector.broadcast %cst_18 : f32 to vector<8x1xf32>
    %20 = arith.mulf %18, %19 : vector<8x1xf32>
    %21 = vector.broadcast %20 : vector<8x1xf32> to vector<8x128xf32>
    %22 = arith.subf %16, %21 : vector<8x128xf32>
    %23 = vector.broadcast %13 : vector<1x128xf32> to vector<8x128xf32>
    %24 = arith.mulf %22, %23 : vector<8x128xf32>
    %25 = arith.mulf %24, %24 : vector<8x128xf32>
    %cst_19 = arith.constant dense<0.000000e+00> : vector<8xf32>
    %26 = vector.multi_reduction <add>, %25, %cst_19 [1] : vector<8x128xf32> to vector<8xf32>
    %27 = vector.shape_cast %26 : vector<8xf32> to vector<8x1xf32>
    %cst_20 = arith.constant 3.125000e-02 : f32
    %28 = vector.broadcast %cst_20 : f32 to vector<8x1xf32>
    %29 = arith.mulf %27, %28 : vector<8x1xf32>
    %cst_21 = arith.constant 9.99999974E-6 : f32
    %30 = vector.broadcast %cst_21 : f32 to vector<8x1xf32>
    %31 = arith.addf %29, %30 : vector<8x1xf32>
    %32 = math.rsqrt %31 : vector<8x1xf32>
    %33 = vector.broadcast %32 : vector<8x1xf32> to vector<8x128xf32>
    %34 = arith.mulf %24, %33 : vector<8x128xf32>
    %35 = vector.broadcast %3 : vector<1x128xf32> to vector<8x128xf32>
    %36 = arith.mulf %34, %35 : vector<8x128xf32>
    %37 = vector.broadcast %4 : vector<1x128xf32> to vector<8x128xf32>
    %38 = arith.addf %36, %37 : vector<8x128xf32>
    %cst_22 = arith.constant 0.000000e+00 : f32
    %39 = vector.broadcast %cst_22 : f32 to vector<8x128xf32>
    %40 = arith.maximumf %38, %39 : vector<8x128xf32>
    %41 = arith.truncf %40 : vector<8x128xf32> to vector<8x128xbf16>
    %cst_23 = arith.constant dense<0.000000e+00> : vector<8x128xf32>
    %42 = tpu.matmul %41, %5, %cst_23 {dimension_numbers = #tpu.dot_dimension_numbers<[1], [0], [0], [1], [0, 0, 1, 1], [], []>} : vector<8x128xbf16>, vector<128x128xbf16>, vector<8x128xf32> -> vector<8x128xf32>
    %43 = vector.broadcast %6 : vector<1x128xf32> to vector<8x128xf32>
    %44 = arith.addf %42, %43 : vector<8x128xf32>
    %cst_24 = arith.constant dense<0.000000e+00> : vector<8xf32>
    %45 = vector.multi_reduction <add>, %44, %cst_24 [1] : vector<8x128xf32> to vector<8xf32>
    %46 = vector.shape_cast %45 : vector<8xf32> to vector<8x1xf32>
    %cst_25 = arith.constant 3.125000e-02 : f32
    %47 = vector.broadcast %cst_25 : f32 to vector<8x1xf32>
    %48 = arith.mulf %46, %47 : vector<8x1xf32>
    %49 = vector.broadcast %48 : vector<8x1xf32> to vector<8x128xf32>
    %50 = arith.subf %44, %49 : vector<8x128xf32>
    %51 = vector.broadcast %13 : vector<1x128xf32> to vector<8x128xf32>
    %52 = arith.mulf %50, %51 : vector<8x128xf32>
    %53 = arith.mulf %52, %52 : vector<8x128xf32>
    %cst_26 = arith.constant dense<0.000000e+00> : vector<8xf32>
    %54 = vector.multi_reduction <add>, %53, %cst_26 [1] : vector<8x128xf32> to vector<8xf32>
    %55 = vector.shape_cast %54 : vector<8xf32> to vector<8x1xf32>
    %cst_27 = arith.constant 3.125000e-02 : f32
    %56 = vector.broadcast %cst_27 : f32 to vector<8x1xf32>
    %57 = arith.mulf %55, %56 : vector<8x1xf32>
    %cst_28 = arith.constant 9.99999974E-6 : f32
    %58 = vector.broadcast %cst_28 : f32 to vector<8x1xf32>
    %59 = arith.addf %57, %58 : vector<8x1xf32>
    %60 = math.rsqrt %59 : vector<8x1xf32>
    %61 = vector.broadcast %60 : vector<8x1xf32> to vector<8x128xf32>
    %62 = arith.mulf %52, %61 : vector<8x128xf32>
    %63 = vector.broadcast %7 : vector<1x128xf32> to vector<8x128xf32>
    %64 = arith.mulf %62, %63 : vector<8x128xf32>
    %65 = vector.broadcast %8 : vector<1x128xf32> to vector<8x128xf32>
    %66 = arith.addf %64, %65 : vector<8x128xf32>
    %cst_29 = arith.constant 0.000000e+00 : f32
    %67 = vector.broadcast %cst_29 : f32 to vector<8x128xf32>
    %68 = arith.maximumf %66, %67 : vector<8x128xf32>
    %c0_30 = arith.constant 0 : index
    %c0_31 = arith.constant 0 : index
    %69 = vector.load %arg10[%c0_30, %c0_31] : memref<8x128xf32, #tpu.memory_space<vmem>>, vector<8x128xf32>
    tpu.vector_store %arg10[%c0_30, %c0_31], %68 {strides = array<i32>} : memref<8x128xf32, #tpu.memory_space<vmem>>, vector<8x128xf32>,
    return
  }
  func.func @transform_0(%arg0: i32) -> (i32, i32) {
    %c0_i32 = arith.constant 0 : i32
    %c0_i32_0 = arith.constant 0 : i32
    return %arg0, %c0_i32 : i32, i32
  }
  func.func @transform_1(%arg0: i32) -> (i32, i32) {
    %c0_i32 = arith.constant 0 : i32
    %c0_i32_0 = arith.constant 0 : i32
    %c0_i32_1 = arith.constant 0 : i32
    return %c0_i32, %c0_i32_0 : i32, i32
  }
  func.func @transform_2(%arg0: i32) -> (i32, i32) {
    %c0_i32 = arith.constant 0 : i32
    %c0_i32_0 = arith.constant 0 : i32
    %c0_i32_1 = arith.constant 0 : i32
    return %c0_i32, %c0_i32_0 : i32, i32
  }
  func.func @transform_3(%arg0: i32) -> (i32, i32) {
    %c0_i32 = arith.constant 0 : i32
    %c0_i32_0 = arith.constant 0 : i32
    %c0_i32_1 = arith.constant 0 : i32
    return %c0_i32, %c0_i32_0 : i32, i32
  }
  func.func @transform_4(%arg0: i32) -> (i32, i32) {
    %c0_i32 = arith.constant 0 : i32
    %c0_i32_0 = arith.constant 0 : i32
    %c0_i32_1 = arith.constant 0 : i32
    return %c0_i32, %c0_i32_0 : i32, i32
  }
  func.func @transform_5(%arg0: i32) -> (i32, i32) {
    %c0_i32 = arith.constant 0 : i32
    %c0_i32_0 = arith.constant 0 : i32
    %c0_i32_1 = arith.constant 0 : i32
    return %c0_i32, %c0_i32_0 : i32, i32
  }
  func.func @transform_6(%arg0: i32) -> (i32, i32) {
    %c0_i32 = arith.constant 0 : i32
    %c0_i32_0 = arith.constant 0 : i32
    %c0_i32_1 = arith.constant 0 : i32
    return %c0_i32, %c0_i32_0 : i32, i32
  }
  func.func @transform_7(%arg0: i32) -> (i32, i32) {
    %c0_i32 = arith.constant 0 : i32
    %c0_i32_0 = arith.constant 0 : i32
    %c0_i32_1 = arith.constant 0 : i32
    return %c0_i32, %c0_i32_0 : i32, i32
  }
  func.func @transform_8(%arg0: i32) -> (i32, i32) {
    %c0_i32 = arith.constant 0 : i32
    %c0_i32_0 = arith.constant 0 : i32
    %c0_i32_1 = arith.constant 0 : i32
    return %c0_i32, %c0_i32_0 : i32, i32
  }
  func.func @transform_9(%arg0: i32) -> (i32, i32) {
    %c0_i32 = arith.constant 0 : i32
    %c0_i32_0 = arith.constant 0 : i32
    return %arg0, %c0_i32 : i32, i32
  }
}

</mosaic_0001>

<bundles_post_ra>
// kernel: tpu_custom_call.1
= control target key start
LH: loop header
LB: loop body
LE: loop exit
PB: predicated region body
PF: predicated region fallthrough
CT: control target
= control target key end

     0   :  { %14 = vsyncpa [#allocation3], 0  ;;  %s729_s0 = inlined_call_operand.hbm [shape: bf16[8,128], index: 0, kind: input, shape index: {}]   ;;  %s730_s1 = inlined_call_operand.hbm [shape: bf16[128,128], index: 1, kind: input, shape index: {}]   ;;  %s731_s2 = inlined_call_operand.vmem [shape: f32[1,128], index: 2, kind: input, shape index: {}]   ;;  %s732_s3 = inlined_call_operand.vmem [shape: f32[1,128], index: 3, kind: input, shape index: {}]   ;;  %s733_s4 = inlined_call_operand.vmem [shape: f32[1,128], index: 4, kind: input, shape index: {}]   ;;  %s734_s5 = inlined_call_operand.hbm [shape: bf16[128,128], index: 5, kind: input, shape index: {}]   ;;  %s735_s6 = inlined_call_operand.vmem [shape: f32[1,128], index: 6, kind: input, shape index: {}]   ;;  %s736_s7 = inlined_call_operand.vmem [shape: f32[1,128], index: 7, kind: input, shape index: {}]   ;;  %s737_s8 = inlined_call_operand.vmem [shape: f32[1,128], index: 8, kind: input, shape index: {}]   ;;  %s738_s9 = inlined_call_operand.hbm [shape: f32[8,128], index: 9, kind: output, shape index: {}]  }
   0x1   :  { %15 = vsyncpa [#allocation6], 0 }
   0x2   :  { %16 = vsyncpa [#allocation4], 0  ;;  %s580_s30 = smov [#allocation5]   ;;  %s486_s13 = scalar_lea.hbm %s730_s1, 1024 }
   0x3   :  { %s32_s10 = sshll.u32 %s580_s30, 4  ;;  %p487_p0 = scmp.ne.s32.totalorder %s730_s1, %s486_s13  ;;  %s33_s10 = int_to_ptr.vmem [resolvable:$true] %s32_s10 }
   0x4   :  { %p490_p1 = scmp.lt.u32.totalorder %s486_s13, %s730_s1 }
   0x6   :  { %p492_p2 = pnand %p490_p1, %p487_p0 }
   0x8   :  { %495 = shalt.err (!%p492_p2)
}
   0x9   :  { %s496_s18 = scalar_lea.vmem %s33_s10, 1024  ;;  %p501_p4 = scmp.lt.s32.totalorder %s33_s10, %s33_s10 }
   0xa   :  { %p497_p3 = scmp.ne.s32.totalorder %s33_s10, %s496_s18  ;;  %p502_p5 = scmp.lt.s32.totalorder %s496_s18, %s496_s18 }
   0xc   :  { %p503_p6 = por %p502_p5, %p501_p4 }
   0xe   :  { %p504_p7 = pnand %p503_p6, %p497_p3 }
  0x10   :  { %507 = shalt.err (!%p504_p7)
}
  0x11   :  { %s581_s19 = smov 64   ;;  %s582_s20 = smov 4  }
  0x12   :  { %38 = dma.hbm_to_vmem [thread:$0]  %s730_s1, 1024, %s33_s10, [#allocation6], %s581_s19, %s581_s19, %s582_s20  }
  0x13   :  { %s583_s23 = smov [#allocation2]   ;;  %s584_s25 = smov [#allocation7]  }
  0x14   :  { %s23_s24 = sshll.u32 %s583_s23, 4  ;;  %s50_s26 = sshll.u32 %s584_s25, 4  ;;  %s24_s24 = int_to_ptr.vmem [resolvable:$true] %s23_s24  ;;  %s51_s26 = int_to_ptr.vmem [resolvable:$true] %s50_s26 }
  0x15   :  { %s508_s29 = scalar_lea.hbm %s729_s0, 64 }
  0x16   :  { %p509_p8 = scmp.ne.s32.totalorder %s729_s0, %s508_s29  ;;  %p512_p9 = scmp.lt.u32.totalorder %s508_s29, %s729_s0 }
  0x18   :  { %p514_p10 = pnand %p512_p9, %p509_p8 }
  0x1a   :  { %517 = shalt.err (!%p514_p10)
}
  0x1b   :  { %s518_s1 = scalar_lea.vmem %s24_s24, 64  ;;  %p523_p12 = scmp.lt.s32.totalorder %s24_s24, %s24_s24 }
  0x1c   :  { %p519_p11 = scmp.ne.s32.totalorder %s24_s24, %s518_s1  ;;  %p524_p13 = scmp.lt.s32.totalorder %s518_s1, %s518_s1 }
  0x1e   :  { %p525_p0 = por %p524_p13, %p523_p12 }
  0x20   :  { %p526_p1 = pnand %p525_p0, %p519_p11 }
  0x22   :  { %529 = shalt.err (!%p526_p1)
}
  0x23   :  { %26 = dma.hbm_to_vmem [thread:$0]  %s729_s0, 64, %s24_s24, [#allocation3]  }
  0x24   :  { %s530_s17 = scalar_lea.hbm %s734_s5, 1024 }
  0x25   :  { %p531_p2 = scmp.ne.s32.totalorder %s734_s5, %s530_s17  ;;  %p534_p3 = scmp.lt.u32.totalorder %s530_s17, %s734_s5 }
  0x27   :  { %p536_p4 = pnand %p534_p3, %p531_p2 }
  0x29   :  { %539 = shalt.err (!%p536_p4)
}
  0x2a   :  { %s540_s25 = scalar_lea.vmem %s51_s26, 1024  ;;  %p545_p6 = scmp.lt.s32.totalorder %s51_s26, %s51_s26 }
  0x2b   :  { %p541_p5 = scmp.ne.s32.totalorder %s51_s26, %s540_s25  ;;  %p546_p7 = scmp.lt.s32.totalorder %s540_s25, %s540_s25 }
  0x2d   :  { %p547_p8 = por %p546_p7, %p545_p6 }
  0x2f   :  { %p548_p9 = pnand %p547_p8, %p541_p5 }
  0x31   :  { %551 = shalt.err (!%p548_p9)
}
  0x32   :  { %56 = dma.hbm_to_vmem [thread:$0]  %s734_s5, 1024, %s51_s26, [#allocation6], %s581_s19, %s581_s19, %s582_s20  }
  0x33   :  { %574 = dma.done.wait [#allocation3], 64  }
  0x34   :  { %575 = vsyncadd [#allocation3], 4294967232 }
  0x35   :  { %576 = dma.done.wait [#allocation6], 2048  }
  0x36   :  { %577 = vsyncadd [#allocation6], 4294965248  ;;  %v585_v0 = vmov 0.0   ;;  %vm586_vm0 = vmmov 0   ;;  %v466_v1 = vld [vmem:[#allocation5] sm:$0xff]   ;;  %v467_v2 = vld [vmem:[#allocation5 + $0x8] sm:$0xff]   ;;  %v112_v18 = vlaneseq }
  0x37   :  { %418 = vmatprep.subr.bf16.mxu0 %v585_v0  ;;  %434 = vmatprep.mubr.msk.bf16.mxu0 %vm586_vm0, %v585_v0  ;;  %v468_v3 = vld [vmem:[#allocation5 + $0x10] sm:$0xff]   ;;  %v469_v4 = vld [vmem:[#allocation5 + $0x18] sm:$0xff]   ;;  %v470_v5 = vld [vmem:[#allocation5 + $0x20] sm:$0xff]   ;;  %s587_s11 = smov [#allocation8]  }
  0x38   :  { %438 = vmatprep.subr.bf16.mxu1 %v585_v0  ;;  %454 = vmatprep.mubr.msk.bf16.mxu1 %vm586_vm0, %v585_v0  ;;  %v471_v6 = vld [vmem:[#allocation5 + $0x28] sm:$0xff]   ;;  %v472_v7 = vld [vmem:[#allocation5 + $0x30] sm:$0xff]   ;;  %v473_v8 = vld [vmem:[#allocation5 + $0x38] sm:$0xff]   ;;  %v113_v19 = vand.u32 127, %v112_v18  ;;  %s367_s12 = sshll.u32 %s587_s11, 4  ;;  %s368_s12 = int_to_ptr.vmem [resolvable:$true] %s367_s12 }
  0x39   :  { %419 = vmatpush3.bf16.msra.mxu0 %v466_v1  ;;  %v73_v9 = vld [vmem:[#allocation2] sm:$0xf]  ;;  %v474_v16 = vld [vmem:[#allocation7] sm:$0xff]   ;;  %v475_v17 = vld [vmem:[#allocation7 + $0x8] sm:$0xff]   ;;  %s552_s13 = scalar_lea.vmem %s368_s12, 128  ;;  %p557_p11 = scmp.lt.s32.totalorder %s368_s12, %s368_s12 }
  0x3a   :  { %420 = vmatprep.subr.bf16.mxu0 %v585_v0  ;;  %v378_v10 = vld [vmem:[%s731_s2] ss:$0 sm:$0xff]  ;;  %439 = vmatpush3.bf16.msra.mxu1 %v474_v16  ;;  %vm114_vm1 = vcmp.lt.s32.totalorder %v113_v19, 32  ;;  %v476_v26 = vld [vmem:[#allocation7 + $0x10] sm:$0xff]   ;;  %v478_v28 = vld [vmem:[#allocation7 + $0x20] sm:$0xff]   ;;  %p553_p10 = scmp.ne.s32.totalorder %s368_s12, %s552_s13  ;;  %p558_p12 = scmp.lt.s32.totalorder %s552_s13, %s552_s13 }
  0x3b   :  { %440 = vmatprep.subr.bf16.mxu1 %v585_v0  ;;  %v377_v22 = vsel %vm114_vm1, 1.0, %v585_v0  ;;  %v477_v27 = vld [vmem:[#allocation7 + $0x18] sm:$0xff]   ;;  %v479_v29 = vld [vmem:[#allocation7 + $0x28] sm:$0xff]   ;;  %v480_v30 = vld [vmem:[#allocation7 + $0x30] sm:$0xff]  }
  0x3c   :  { %v481_v31 = vld [vmem:[#allocation7 + $0x38] sm:$0xff]   ;;  %p559_p13 = por %p558_p12, %p557_p11 }
  0x3d   :  { %421 = vmatpush3.bf16.msra.mxu0 %v467_v2  ;;  %v387_v36 = vld [vmem:[%s732_s3] ss:$0 sm:$0xff] }
  0x3e   :  { %422 = vmatprep.subr.bf16.mxu0 %v585_v0  ;;  %441 = vmatpush3.bf16.msra.mxu1 %v475_v17  ;;  %v388_v38 = vld [vmem:[%s733_s4] ss:$0 sm:$0xff]  ;;  %p560_p0 = pnand %p559_p13, %p553_p10 }
  0x3f   :  { %442 = vmatprep.subr.bf16.mxu1 %v585_v0  ;;  %v389_v43 = vld [vmem:[%s735_s6] ss:$0 sm:$0xff] }
  0x40   :  { %v398_v58 = vld [vmem:[%s736_s7] ss:$0 sm:$0xff] }
  0x41   :  { %423 = vmatpush3.bf16.msra.mxu0 %v468_v3  ;;  %v399_v60 = vld [vmem:[%s737_s8] ss:$0 sm:$0xff] }
  0x42   :  { %424 = vmatprep.subr.bf16.mxu0 %v585_v0  ;;  %443 = vmatpush3.bf16.msra.mxu1 %v476_v26 }
  0x43   :  { %444 = vmatprep.subr.bf16.mxu1 %v585_v0 }
  0x45   :  { %425 = vmatpush3.bf16.msra.mxu0 %v469_v4 }
  0x46   :  { %426 = vmatprep.subr.bf16.mxu0 %v585_v0  ;;  %445 = vmatpush3.bf16.msra.mxu1 %v477_v27 }
  0x47   :  { %446 = vmatprep.subr.bf16.mxu1 %v585_v0 }
  0x49   :  { %427 = vmatpush3.bf16.msra.mxu0 %v470_v5 }
  0x4a   :  { %428 = vmatprep.subr.bf16.mxu0 %v585_v0  ;;  %447 = vmatpush3.bf16.msra.mxu1 %v478_v28 }
  0x4b   :  { %448 = vmatprep.subr.bf16.mxu1 %v585_v0 }
  0x4d   :  { %429 = vmatpush3.bf16.msra.mxu0 %v471_v6 }
  0x4e   :  { %430 = vmatprep.subr.bf16.mxu0 %v585_v0  ;;  %449 = vmatpush3.bf16.msra.mxu1 %v479_v29 }
  0x4f   :  { %450 = vmatprep.subr.bf16.mxu1 %v585_v0 }
  0x51   :  { %431 = vmatpush3.bf16.msra.mxu0 %v472_v7 }
  0x52   :  { %432 = vmatprep.subr.bf16.mxu0 %v585_v0  ;;  %451 = vmatpush3.bf16.msra.mxu1 %v480_v30 }
  0x53   :  { %452 = vmatprep.subr.bf16.mxu1 %v585_v0 }
  0x55   :  { %433 = vmatpush3.bf16.msra.mxu0 %v473_v8 }
  0x56   :  { %453 = vmatpush3.bf16.msra.mxu1 %v481_v31 }
  0x58   :  { %435 = vmatmul.mubr.bf16.vlgmr.msra.gmra.mrb[0].mxu0 %v73_v9 }
 0x12b   :  { %v205_v11 = vpop.f32.mrb[0].mxu0 }
 0x12c   :  { %v206_v12 = vadd.f32 %v378_v10, %v205_v11  ;;  %v436_v13 = vpop.f32.mrb[1].mxu0 }
 0x12d   :  { %v208_v14 = vpop.f32.mrb[2].mxu0 }
 0x12e   :  { %211 = vadd.xlane.f32.xlu0 %v206_v12  ;;  %v437_v15 = vpop.f32.mrb[3].mxu0 }
 0x1bb   :  { %v212_v20 = vpop.xlane.xlu0 %211 }
 0x1bc   :  { %v213_v21 = vmul.f32 0.03125, %v212_v20 }
 0x1be   :  { %v214_v23 = vsub.f32 %v206_v12, %v213_v21 }
 0x1c0   :  { %v215_v24 = vmul.f32 %v377_v22, %v214_v23 }
 0x1c2   :  { %v216_v25 = vmul.f32 %v215_v24, %v215_v24 }
 0x1c4   :  { %217 = vadd.xlane.f32.xlu0 %v216_v25 }
 0x251   :  { %v218_v32 = vpop.xlane.xlu0 %217 }
 0x252   :  { %v219_v33 = vmul.f32 0.03125, %v218_v32 }
 0x254   :  { %v220_v34 = vadd.f32 1e-05, %v219_v33 }
 0x256   :  { %482 = vrsqrt.f32 %v220_v34 }
 0x260   :  { %v483_v35 = vpop.eup %482 }
 0x261   :  { %v222_v37 = vmul.f32 %v483_v35, %v215_v24 }
 0x263   :  { %v229_v39 = vmul.f32 %v387_v36, %v222_v37 }
 0x265   :  { %v236_v40 = vadd.f32 %v388_v38, %v229_v39 }
 0x267   :  { %v237_v41 = vmax.f32 %v236_v40, 0.0 }
 0x269   :  { %v238_v42 = vpack.c.bf16 %v237_v41, %v237_v41 }
 0x26b   :  { %455 = vmatmul.mubr.bf16.vlgmr.msra.gmra.mrb[0].mxu1 %v238_v42 }
 0x33e   :  { %v327_v44 = vpop.f32.mrb[0].mxu1 }
 0x33f   :  { %v328_v45 = vadd.f32 %v389_v43, %v327_v44  ;;  %v456_v46 = vpop.f32.mrb[1].mxu1 }
 0x340   :  { %v330_v47 = vpop.f32.mrb[2].mxu1 }
 0x341   :  { %333 = vadd.xlane.f32.xlu1 %v328_v45  ;;  %v457_v48 = vpop.f32.mrb[3].mxu1 }
 0x3ce   :  { %v334_v49 = vpop.xlane.xlu1 %333 }
 0x3cf   :  { %v335_v50 = vmul.f32 0.03125, %v334_v49 }
 0x3d1   :  { %v336_v51 = vsub.f32 %v328_v45, %v335_v50 }
 0x3d3   :  { %v337_v52 = vmul.f32 %v377_v22, %v336_v51 }
 0x3d5   :  { %v338_v53 = vmul.f32 %v337_v52, %v337_v52 }
 0x3d7   :  { %339 = vadd.xlane.f32.xlu1 %v338_v53 }
 0x464   :  { %v340_v54 = vpop.xlane.xlu1 %339 }
 0x465   :  { %v341_v55 = vmul.f32 0.03125, %v340_v54 }
 0x467   :  { %v342_v56 = vadd.f32 1e-05, %v341_v55 }
 0x469   :  { %484 = vrsqrt.f32 %v342_v56 }
 0x473   :  { %v485_v57 = vpop.eup %484 }
 0x474   :  { %v344_v59 = vmul.f32 %v485_v57, %v337_v52 }
 0x476   :  { %v351_v61 = vmul.f32 %v398_v58, %v344_v59 }
 0x478   :  { %v358_v62 = vadd.f32 %v399_v60, %v351_v61 }
 0x47a   :  { %v359_v63 = vmax.f32 %v358_v62, 0.0 }
 0x47c   :  { %360 = vst [vmem:[#allocation8] sm:$0xff] %v359_v63 }
 0x47d   :  { %563 = shalt.err (!%p560_p0)
}
 0x47e   :  { %s564_s10 = scalar_lea.hbm %s738_s9, 128 }
 0x47f   :  { %p565_p1 = scmp.ne.s32.totalorder %s738_s9, %s564_s10  ;;  %p568_p2 = scmp.lt.u32.totalorder %s564_s10, %s738_s9 }
 0x481   :  { %p570_p3 = pnand %p568_p2, %p565_p1 }
 0x483   :  { %573 = shalt.err (!%p570_p3)
}
 0x484   :  { %370 = dma.vmem_to_hbm [thread:$0]  %s368_s12, 128, %s738_s9, [#allocation4]  }
 0x485   :  { %578 = dma.done.wait [#allocation4], 128  }
 0x486   :  { %579 = vsyncadd [#allocation4], 4294967168 }
 0x487   :  { %374 = vsyncpa [#allocation3], 1 }
 0x488   :  { %375 = vsyncpa [#allocation6], 1 }
 0x489   :  { %376 = vsyncpa [#allocation4], 1 }

</bundles_post_ra>
